<compile_context>
chip_gen: v7x
topology: tpu7x:2x2x1
jax: 0.10.0
libtpu: 0.0.40
codegen_flags: <defaults>
</compile_context>

<pallas_src>
import functools

import jax
import jax.numpy as jnp
from jax.experimental import pallas as pl
from jax.experimental.pallas import tpu as pltpu

_MIB = 1 << 20


# ---------------------------------------------------------------------------
# Hardware-aware budgets
# ---------------------------------------------------------------------------
def _vmem_capacity_bytes():
    """Per-core VMEM capacity; conservative (v7x 64 MiB) fallback if unknown."""
    try:
        v = int(pltpu.get_tpu_info().vmem_capacity_bytes)
        if v > 0:
            return v
    except Exception:
        pass
    return 64 * _MIB


def _compiler_params(dims, block_bytes, vmem_phys):
    # 2x for double buffering + headroom; cap below the physical per-core VMEM
    # (~56 MiB on v7x, ~112 MiB on v5e/v6e).
    need = 2 * block_bytes + 4 * _MIB
    cap = min(max(32 * _MIB, vmem_phys - 8 * _MIB), 112 * _MIB)
    vmem = max(32 * _MIB, min(need, cap))
    return pltpu.CompilerParams(dimension_semantics=dims, vmem_limit_bytes=vmem)


# ---------------------------------------------------------------------------
# Kernels
# ---------------------------------------------------------------------------
def _eca_fused_kernel(x_ref, w_ref, o_ref, *, k_size, inv_hw):
    """One batch-tile: pool + channel conv1d + sigmoid + scale in one pass."""
    # Per-channel mean over the flattened spatial (lane) axis, accumulated in
    # f32 directly -- no full-block f32 copy is kept live.
    y = jnp.sum(x_ref[...], axis=-1, dtype=jnp.float32) * inv_hw      # (bt, C)

    c = y.shape[-1]
    pad = (k_size - 1) // 2
    if pad > 0:
        zeros = jnp.zeros((y.shape[0], pad), dtype=jnp.float32)
        ypad = jnp.concatenate([zeros, y, zeros], axis=-1)            # (bt, C+k-1)
    else:
        ypad = y

    # Cross-correlation over the channel axis; taps are SMEM scalar reads.
    conv = jnp.zeros_like(y)
    for j in range(k_size):
        conv = conv + w_ref[j] * ypad[:, j:j + c]

    gate = jax.nn.sigmoid(conv)                                       # (bt, C) f32

    # Scale straight from the input ref; cast the gate, not the input.
    o_ref[...] = (x_ref[...] * gate.astype(o_ref.dtype)[:, :, None]).astype(o_ref.dtype)


def _pool_gate_kernel(x_ref, w_ref, gate_ref, *, k_size, inv_hw):
    """Accumulate per-channel sums over spatial tiles; on the last tile apply
    the k-tap channel conv + sigmoid (fused gate finalize) in place."""
    h = pl.program_id(1)

    @pl.when(h == 0)
    def _():
        gate_ref[...] = jnp.zeros_like(gate_ref)

    partial = jnp.sum(x_ref[...], axis=-1, dtype=jnp.float32)         # (1, C)
    gate_ref[...] += partial[:, :, None]                              # (1, C, 1)

    @pl.when(h == pl.num_programs(1) - 1)
    def _():
        y = gate_ref[...][:, :, 0] * inv_hw                           # (1, C) mean
        c = y.shape[-1]
        pad = (k_size - 1) // 2
        if pad > 0:
            zeros = jnp.zeros((1, pad), dtype=jnp.float32)
            ypad = jnp.concatenate([zeros, y, zeros], axis=-1)
        else:
            ypad = y
        conv = jnp.zeros_like(y)
        for j in range(k_size):
            conv = conv + w_ref[j] * ypad[:, j:j + c]
        gate_ref[...] = jax.nn.sigmoid(conv)[:, :, None]              # (1, C, 1)


def _scale_kernel(x_ref, gate_ref, o_ref):
    """out = x * gate, per (batch, channel-tile, spatial-tile)."""
    g = gate_ref[...].astype(o_ref.dtype)                             # (1, ct, 1)
    o_ref[...] = (x_ref[...] * g).astype(o_ref.dtype)


# ---------------------------------------------------------------------------
# Tile-picking helpers
# ---------------------------------------------------------------------------
def _largest_divisor(n, cap, align):
    d = (min(cap, n) // align) * align
    while d >= align:
        if n % d == 0:
            return d
        d -= align
    return None


def _pick_hw_tile(hw, c, itemsize, target_bytes):
    """Pick a lane-aligned spatial tile. Returns (hw_tile, padded_hw)."""
    cap = max(128, target_bytes // max(1, c * itemsize))
    if hw <= cap:
        return hw, hw
    d = _largest_divisor(hw, cap, align=128)
    if d is not None:
        return d, hw
    # Ragged spatial extent with no aligned divisor: pad HW to a multiple of
    # 128 so tiles stay bounded (zeros don't affect the pooled mean; padded
    # outputs are sliced off in the wrapper).
    hw_pad = ((hw + 127) // 128) * 128
    d = _largest_divisor(hw_pad, cap, align=128)
    return (d if d is not None else 128), hw_pad


def _pick_c_tile(c, hw_tile, itemsize, target_bytes, align):
    cap = max(align, target_bytes // max(1, hw_tile * itemsize))
    if c <= cap:
        return c
    d = _largest_divisor(c, cap, align=align)
    # TODO(synk): pad the channel axis when no aligned divisor exists instead of
    # falling back to the full channel extent.
    return d if d is not None else c


# ---------------------------------------------------------------------------
# Forward
# ---------------------------------------------------------------------------
def eca_forward(x, weight, k_size=5, *, force_tiled=False, c_tile=None, hw_tile=None):
    """ECA forward. x: (B, C, H, W); weight: (k_size,) Conv1d(1,1,k) weight."""
    assert k_size % 2 == 1, "ECA requires odd k_size (Conv1d 'same' with (k-1)//2 pad)"
    b, c, h, w = x.shape
    hw = h * w
    itemsize = jnp.dtype(x.dtype).itemsize
    inv_hw = 1.0 / float(hw)
    # Sublane alignment for channel tiles is dtype-aware: f32 8, bf16 16, int8 32.
    c_align = max(8, 32 // max(1, itemsize))

    # Generation-aware budgets.
    vmem_phys = _vmem_capacity_bytes()
    two_cores = vmem_phys <= 64 * _MIB           # v7x: 64 MiB / TC, 2 TCs per chip
    fused_budget = min((vmem_phys * 3) // 4, 96 * _MIB)   # ~48 MiB v7x, ~96 MiB v5e/v6e
    tile_target = 12 * _MIB if vmem_phys >= 96 * _MIB else 8 * _MIB

    # Keep spatial flattened on the lane axis (lane-dense loads/stores).
    x_flat = x.reshape(b, c, hw)
    w_smem = jnp.asarray(weight, dtype=jnp.float32).reshape(k_size)

    slab_bytes = c * hw * itemsize               # one batch element, one direction

    if not force_tiled and 4 * slab_bytes <= fused_budget:
        # ----------------------------- fused path ---------------------------
        # 2 HBM passes total (1 read + 1 write) vs 3 for the tiled path.
        divs = [d for d in range(1, b + 1)
                if b % d == 0 and 4 * d * slab_bytes <= fused_budget]
        if two_cores:
            # Keep >= 2 grid steps so both v7x TensorCores get work.
            pref = [d for d in divs if b // d >= 2]
            b_tile = max(pref) if pref else max(divs)
        else:
            # Single-TC chips: fattest step the budget allows.
            b_tile = max(divs)
        grid = (b // b_tile,)
        block_bytes = 2 * b_tile * slab_bytes
        out_flat = pl.pallas_call(
            functools.partial(_eca_fused_kernel, k_size=k_size, inv_hw=inv_hw),
            out_shape=jax.ShapeDtypeStruct((b, c, hw), x.dtype),
            grid_spec=pltpu.PrefetchScalarGridSpec(
                num_scalar_prefetch=0,
                grid=grid,
                in_specs=[
                    pl.BlockSpec((b_tile, c, hw), lambda i: (i, 0, 0)),
                    # Tiny conv taps in SMEM (scalar path), not a padded VMEM tile.
                    pl.BlockSpec(memory_space=pltpu.MemorySpace.SMEM),
                ],
                out_specs=pl.BlockSpec((b_tile, c, hw), lambda i: (i, 0, 0)),
            ),
            compiler_params=_compiler_params(("parallel",), block_bytes, vmem_phys),
            cost_estimate=pl.CostEstimate(
                flops=int(2 * b * c * hw + 2 * b * c * k_size),
                transcendentals=int(b * c),
                bytes_accessed=int(2 * b * c * hw * itemsize + 4 * k_size),
            ),
        )(x_flat, w_smem)
        return out_flat.reshape(b, c, h, w)

    # ------------------- tiled path (large slabs, v7x-safe) ------------------
    if hw_tile is None:
        hw_tile, hw_pad = _pick_hw_tile(hw, c, itemsize, tile_target)
    else:
        hw_pad = hw if hw % hw_tile == 0 else ((hw + hw_tile - 1) // hw_tile) * hw_tile
    if c_tile is None:
        c_tile = _pick_c_tile(c, hw_tile, itemsize, tile_target, c_align)

    assert hw_pad % hw_tile == 0 and (hw_tile % 128 == 0 or hw_tile == hw_pad)
    assert c % c_tile == 0 and (c_tile % c_align == 0 or c_tile == c)

    x_work = x_flat
    if hw_pad != hw:
        # Zero padding does not change the mean (we divide by the true HW) and
        # the padded output columns are sliced off below.
        x_work = jnp.pad(x_flat, ((0, 0), (0, 0), (0, hw_pad - hw)))

    n_hw = hw_pad // hw_tile
    n_c = c // c_tile

    # 1) Pool + gate fused: (B, C, HWp) -> sigmoid(conv1d(mean)) as (B, C, 1) f32.
    pool_block_bytes = c * hw_tile * itemsize + 4 * c
    gate = pl.pallas_call(
        functools.partial(_pool_gate_kernel, k_size=k_size, inv_hw=inv_hw),
        out_shape=jax.ShapeDtypeStruct((b, c, 1), jnp.float32),
        grid_spec=pltpu.PrefetchScalarGridSpec(
            num_scalar_prefetch=0,
            grid=(b, n_hw),
            in_specs=[
                pl.BlockSpec((1, c, hw_tile), lambda i, j: (i, 0, j)),
                pl.BlockSpec(memory_space=pltpu.MemorySpace.SMEM),
            ],
            out_specs=pl.BlockSpec((1, c, 1), lambda i, j: (i, 0, 0)),
        ),
        compiler_params=_compiler_params(("parallel", "arbitrary"),
                                         pool_block_bytes, vmem_phys),
        cost_estimate=pl.CostEstimate(
            flops=int(b * c * hw + 2 * b * c * k_size),
            transcendentals=int(b * c),
            bytes_accessed=int(b * c * hw_pad * itemsize + 4 * b * c + 4 * k_size),
        ),
    )(x_work, w_smem)

    # 2) Scale: out = x * gate, fully parallel (B, C-tiles, HW-tiles) grid.
    scale_block_bytes = 2 * c_tile * hw_tile * itemsize + 4 * c_tile
    out_flat = pl.pallas_call(
        _scale_kernel,
        out_shape=jax.ShapeDtypeStruct((b, c, hw_pad), x.dtype),
        grid_spec=pltpu.PrefetchScalarGridSpec(
            num_scalar_prefetch=0,
            grid=(b, n_c, n_hw),
            in_specs=[
                pl.BlockSpec((1, c_tile, hw_tile), lambda i, j, k: (i, j, k)),
                pl.BlockSpec((1, c_tile, 1), lambda i, j, k: (i, j, 0)),
            ],
            out_specs=pl.BlockSpec((1, c_tile, hw_tile), lambda i, j, k: (i, j, k)),
        ),
        compiler_params=_compiler_params(
            ("parallel", "parallel", "parallel"), scale_block_bytes, vmem_phys),
        cost_estimate=pl.CostEstimate(
            flops=int(b * c * hw),
            transcendentals=0,
            bytes_accessed=int(2 * b * c * hw_pad * itemsize + 4 * b * c),
        ),
    )(x_work, gate)

    if hw_pad != hw:
        out_flat = out_flat[:, :, :hw]
    return out_flat.reshape(b, c, h, w)


# ---------------------------------------------------------------------------
# Pure-JAX reference mirroring the PyTorch module
# ---------------------------------------------------------------------------
def _reference_eca(x, weight, k_size=5):
    b, c, h, w = x.shape
    y = jnp.mean(x, axis=(2, 3))                    # (B, C)
    pad = (k_size - 1) // 2
    ypad = jnp.pad(y, ((0, 0), (pad, pad)))
    conv = jnp.zeros_like(y)
    for j in range(k_size):
        conv = conv + weight[j] * ypad[:, j:j + c]
    gate = jax.nn.sigmoid(conv)
    return x * gate[:, :, None, None]


if __name__ == "__main__":
    key = jax.random.PRNGKey(0)
    kx, kw, kx2, kx3 = jax.random.split(key, 4)

    K_SIZE = 5
    weight = jax.random.normal(kw, (K_SIZE,), dtype=jnp.float32) * 0.1

    # Test 1: fused (whole-slab) path at the module's nominal small shape.
    B, C, H, W = 2, 4, 16, 16
    x = jax.random.normal(kx, (B, C, H, W), dtype=jnp.float32)
    out = jax.block_until_ready(eca_forward(x, weight, k_size=K_SIZE))
    ref = _reference_eca(x, weight, k_size=K_SIZE)
    assert out.shape == (B, C, H, W)
    assert jnp.allclose(out, ref, atol=1e-5, rtol=1e-5), "fused path mismatch"

    # Test 2: explicitly exercise the tiled (pool+gate -> scale) path, f32.
    B2, C2, H2, W2 = 2, 16, 16, 16
    x2 = jax.random.normal(kx2, (B2, C2, H2, W2), dtype=jnp.float32)
    out2 = jax.block_until_ready(
        eca_forward(x2, weight, k_size=K_SIZE, force_tiled=True, c_tile=8, hw_tile=128))
    ref2 = _reference_eca(x2, weight, k_size=K_SIZE)
    assert out2.shape == (B2, C2, H2, W2)
    assert jnp.allclose(out2, ref2, atol=1e-5, rtol=1e-5), "tiled path mismatch"

    # Test 3: tiled path with bf16 input (dtype-aware channel-tile alignment).
    B3, C3, H3, W3 = 2, 32, 16, 16
    x3 = jax.random.normal(kx3, (B3, C3, H3, W3), dtype=jnp.float32).astype(jnp.bfloat16)
    out3 = jax.block_until_ready(
        eca_forward(x3, weight, k_size=K_SIZE, force_tiled=True))
    ref3 = _reference_eca(x3.astype(jnp.float32), weight, k_size=K_SIZE)
    assert out3.shape == (B3, C3, H3, W3)
    assert jnp.allclose(out3.astype(jnp.float32), ref3, atol=5e-2, rtol=5e-2), \
        "bf16 tiled path mismatch"

    print("KERNEL_OK")
</pallas_src>

<mosaic_0001>
module attributes {stable_mosaic.version = 11 : i64} {
  func.func @_eca_fused_kernel(%arg0: i32, %arg1: memref<1x4x256xf32, #tpu.memory_space<vmem>>, %arg2: memref<5xf32, #tpu.memory_space<smem>>, %arg3: memref<1x4x256xf32, #tpu.memory_space<vmem>>) attributes {dimension_semantics = [#tpu.dimension_semantics<parallel>], iteration_bounds = array<i64: 2>, scalar_prefetch = 0 : i64, scratch_operands = 0 : i64, tpu.core_type = #tpu.core_type<tc>, window_params = [{transform_indices = @transform_0, window_bounds = array<i64: 1, 4, 256>}, {transform_indices = @transform_1, window_bounds = array<i64: 5>}, {transform_indices = @transform_2, window_bounds = array<i64: 1, 4, 256>}]} {
    %c0 = arith.constant 0 : index
    %c0_0 = arith.constant 0 : index
    %c0_1 = arith.constant 0 : index
    %0 = vector.load %arg1[%c0, %c0_0, %c0_1] : memref<1x4x256xf32, #tpu.memory_space<vmem>>, vector<1x4x256xf32>
    %cst = arith.constant dense<0.000000e+00> : vector<1x4xf32>
    %1 = vector.multi_reduction <add>, %0, %cst [2] : vector<1x4x256xf32> to vector<1x4xf32>
    %cst_2 = arith.constant 3.906250e-03 : f32
    %2 = vector.broadcast %cst_2 : f32 to vector<1x4xf32>
    %3 = arith.mulf %1, %2 : vector<1x4xf32>
    %cst_3 = arith.constant 0.000000e+00 : f32
    %4 = vector.broadcast %cst_3 : f32 to vector<1x2xf32>
    %5 = tpu.concatenate %4, %3, %4 in 1 : vector<1x2xf32>, vector<1x4xf32>, vector<1x2xf32> -> vector<1x8xf32>
    %cst_4 = arith.constant 0.000000e+00 : f32
    %6 = vector.broadcast %cst_4 : f32 to vector<1x4xf32>
    %c0_5 = arith.constant 0 : index
    %7 = memref.load %arg2[%c0_5] : memref<5xf32, #tpu.memory_space<smem>>
    %8 = vector.extract_strided_slice %5 {offsets = [0, 0], sizes = [1, 4], strides = [1, 1]} : vector<1x8xf32> to vector<1x4xf32>
    %9 = vector.broadcast %7 : f32 to vector<1x4xf32>
    %10 = arith.mulf %9, %8 : vector<1x4xf32>
    %11 = arith.addf %6, %10 : vector<1x4xf32>
    %c1 = arith.constant 1 : index
    %12 = memref.load %arg2[%c1] : memref<5xf32, #tpu.memory_space<smem>>
    %13 = vector.extract_strided_slice %5 {offsets = [0, 1], sizes = [1, 4], strides = [1, 1]} : vector<1x8xf32> to vector<1x4xf32>
    %14 = vector.broadcast %12 : f32 to vector<1x4xf32>
    %15 = arith.mulf %14, %13 : vector<1x4xf32>
    %16 = arith.addf %11, %15 : vector<1x4xf32>
    %c2 = arith.constant 2 : index
    %17 = memref.load %arg2[%c2] : memref<5xf32, #tpu.memory_space<smem>>
    %18 = vector.extract_strided_slice %5 {offsets = [0, 2], sizes = [1, 4], strides = [1, 1]} : vector<1x8xf32> to vector<1x4xf32>
    %19 = vector.broadcast %17 : f32 to vector<1x4xf32>
    %20 = arith.mulf %19, %18 : vector<1x4xf32>
    %21 = arith.addf %16, %20 : vector<1x4xf32>
    %c3 = arith.constant 3 : index
    %22 = memref.load %arg2[%c3] : memref<5xf32, #tpu.memory_space<smem>>
    %23 = vector.extract_strided_slice %5 {offsets = [0, 3], sizes = [1, 4], strides = [1, 1]} : vector<1x8xf32> to vector<1x4xf32>
    %24 = vector.broadcast %22 : f32 to vector<1x4xf32>
    %25 = arith.mulf %24, %23 : vector<1x4xf32>
    %26 = arith.addf %21, %25 : vector<1x4xf32>
    %c4 = arith.constant 4 : index
    %27 = memref.load %arg2[%c4] : memref<5xf32, #tpu.memory_space<smem>>
    %28 = vector.extract_strided_slice %5 {offsets = [0, 4], sizes = [1, 4], strides = [1, 1]} : vector<1x8xf32> to vector<1x4xf32>
    %29 = vector.broadcast %27 : f32 to vector<1x4xf32>
    %30 = arith.mulf %29, %28 : vector<1x4xf32>
    %31 = arith.addf %26, %30 : vector<1x4xf32>
    %32 = arith.negf %31 : vector<1x4xf32>
    %33 = math.exp %32 : vector<1x4xf32>
    %cst_6 = arith.constant 1.000000e+00 : f32
    %34 = vector.broadcast %cst_6 : f32 to vector<1x4xf32>
    %35 = arith.addf %34, %33 : vector<1x4xf32>
    %36 = arith.divf %34, %35 : vector<1x4xf32>
    %c0_7 = arith.constant 0 : index
    %c0_8 = arith.constant 0 : index
    %c0_9 = arith.constant 0 : index
    %37 = vector.load %arg1[%c0_7, %c0_8, %c0_9] : memref<1x4x256xf32, #tpu.memory_space<vmem>>, vector<1x4x256xf32>
    %38 = vector.shape_cast %36 : vector<1x4xf32> to vector<1x4x1xf32>
    %39 = vector.broadcast %38 : vector<1x4x1xf32> to vector<1x4x256xf32>
    %40 = arith.mulf %37, %39 : vector<1x4x256xf32>
    %c0_10 = arith.constant 0 : index
    %c0_11 = arith.constant 0 : index
    %c0_12 = arith.constant 0 : index
    %41 = vector.load %arg3[%c0_10, %c0_11, %c0_12] : memref<1x4x256xf32, #tpu.memory_space<vmem>>, vector<1x4x256xf32>
    tpu.vector_store %arg3[%c0_10, %c0_11, %c0_12], %40 {strides = array<i32>} : memref<1x4x256xf32, #tpu.memory_space<vmem>>, vector<1x4x256xf32>,
    return
  }
  func.func @transform_0(%arg0: i32) -> (i32, i32, i32) {
    %c0_i32 = arith.constant 0 : i32
    %c0_i32_0 = arith.constant 0 : i32
    %c0_i32_1 = arith.constant 0 : i32
    return %arg0, %c0_i32, %c0_i32_0 : i32, i32, i32
  }
  func.func @transform_1(%arg0: i32) -> i32 {
    %c0_i32 = arith.constant 0 : i32
    %c0_i32_0 = arith.constant 0 : i32
    return %c0_i32 : i32
  }
  func.func @transform_2(%arg0: i32) -> (i32, i32, i32) {
    %c0_i32 = arith.constant 0 : i32
    %c0_i32_0 = arith.constant 0 : i32
    %c0_i32_1 = arith.constant 0 : i32
    return %arg0, %c0_i32, %c0_i32_0 : i32, i32, i32
  }
}

</mosaic_0001>

<bundles_post_ra>
// kernel: tpu_custom_call.1
= control target key start
LH: loop header
LB: loop body
LE: loop exit
PB: predicated region body
PF: predicated region fallthrough
CT: control target
= control target key end

     0   :  { %7 = vsyncpa [#allocation3], 0  ;;  %s787_s0 = inlined_call_operand.hbm [shape: f32[2,4,256], index: 0, kind: input, shape index: {}]   ;;  %s788_s1 = inlined_call_operand.vmem [shape: f32[5], index: 1, kind: input, shape index: {}]   ;;  %s789_s2 = inlined_call_operand.hbm [shape: f32[2,4,256], index: 2, kind: output, shape index: {}]  }
   0x1   :  { %9 = vsyncpa [#allocation3 + $0x1], 0 }
   0x2   :  { %10 = vsyncpa [#allocation5], 0 }
   0x3   :  { %11 = vsyncpa [#allocation4], 0 }
   0x4   :  { %13 = vsyncpa [#allocation4 + $0x1], 0  ;;  %s585_s9 = smov 0   ;;  %s587_s10 = smov 0  }
   0x5   :  { %s589_s11 = smov 0   ;;  %s591_s12 = smov 0  }
   0x6 LB: > { %s606_s13 = sadd.s32 4294967295, %s560_s12   ;;  %s355_s14 = sadd.s32 4294967294, %s560_s12   ;;  %s560_s12 = sphi %s591_s12, %s810_s12   ;;  %s556_s11 = sphi %s589_s11, %s809_s11   ;;  %s552_s10 = sphi %s587_s10, %s808_s10   ;;  %s548_s9 = sphi %s585_s9, %s807_s9  }
   0x7   : > { %p39_p0 = scmp.ne.s32.totalorder %s552_s10, %s548_s9  ;;  %p790_p1 = scmp.eq.s32.totalorder %s606_s13, 0 }
   0x8   : > { %p90_p3 = scmp.eq.s32.totalorder %s355_s14, 1  ;;  %p356_p5 = scmp.ge.s32.totalorder %s560_s12, 1 }
   0x9   : > { %p615_p4 = por %p790_p1, %p39_p0  ;;  %p97_p7 = scmp.lt.s32.totalorder %s560_s12, 3 }
   0xa   : > { %p620_p6 = por %p90_p3, %p39_p0  ;;  %s110_s19 = sshll.u32 %s788_s1, 4  ;;  %s111_s19 = int_to_ptr.vmem [resolvable:$true] %s110_s19 }
   0xb   : > { %s793_s15 = scalar_select %p615_p4, 1, 0 }
   0xc   : > { %s794_s16 = scalar_select %p620_p6, 1, 0 }
   0xd   : > { %p628_p8 = pnand %p356_p5, %p97_p7  ;;  %s636_s21 = sadd.s32 1, %s560_s12  }
   0xe   : > { %s23_s23 = ssub.s32 %s560_s12, %s636_s21  ;;  %s26_s25 = sadd.s32 1, %s556_s11 }
   0xf   : > { %p386_p10 = pneg %p628_p8  ;;  %p646_p12 = scmp.eq.s32.totalorder %s23_s23, 0 }
  0x10   : > { %p33_p13 = scmp.ne.s32.totalorder %s556_s11, %s552_s10  ;;  %s445_s26 = scalar_lea.vmem %s111_s19, 16 }
  0x11   : > { %p640_p11 = pnand %p386_p10, %p790_p1  ;;  %p446_p0 = scmp.ne.s32.totalorder %s111_s19, %s445_s26 }
  0x12   : > { %p453_p9 = scmp.lt.s32.totalorder %s111_s19, %s111_s19  ;;  %p454_p2 = scmp.lt.s32.totalorder %s445_s26, %s445_s26 }
  0x13   : > { %p447_p3 = pneg %p640_p11 }
  0x14   : > { %p455_p10 = por %p454_p2, %p453_p9 }
  0x15   : > { %p448_p5 = pnand %p447_p3, %p446_p0 }
  0x17   : > { %p449_p7 = pneg %p448_p5 }
  0x19   : > { %p456_p1 = pnand %p455_p10, %p449_p7 }
  0x1b   : > { %459 = shalt.err (!%p456_p1)
}
  0x1c   : > { %s562_s27 = smov [#allocation6]   ;;  %p34_p2 = scmp.eq.s32.totalorder %s560_s12, 0 }
  0x1d   : > { %389 = dma.vmem_to_smem (!%p640_p11), %s111_s19, 16, %s562_s27, [#allocation5]  }
  0x1e   : > { %s660_s28 = scalar_select %p646_p12, %s556_s11, %s26_s25  }
  0x1f   : > { %p798_p1 = scmp.eq.s32.totalorder %s606_s13, 1  ;;  %p399_p0 = scmp.lt.s32.totalorder %s560_s12, 2 }
  0x20   : > { %s121_s30 = sand.u32 1, %s556_s11   ;;  %p35_p3 = por %p34_p2, %p33_p13 }
  0x21   : > { %p668_p9 = por %p798_p1, %p33_p13  ;;  %s359_s3 = sshll.u32 %s121_s30, 3 }
  0x22   : > { %s376_s4 = sshll.u32 %s560_s12, 7  ;;  %s125_s8 = scalar_lea.vmem [#allocation2], %s359_s3 }
  0x23   : > { %s799_s29 = scalar_select %p668_p9, 1, 0 }
  0x24   : > { %s681_s7 = scalar_lea.hbm %s787_s0, %s376_s4  ;;  %s133_s14 = sshll.u32 %s125_s8, 4  ;;  %s687_s14 = int_to_ptr.vmem [resolvable:$true] %s133_s14 }
  0x25   : > { %p683_p11 = pnand %p399_p0, %p35_p3  ;;  %s122_s18 = scalar_lea.sflag [#allocation3], %s121_s30 }
  0x26   : > { %s460_s19 = scalar_lea.hbm %s681_s7, 128  ;;  %s465_s24 = scalar_lea.hbm %s787_s0, 256 }
  0x27   : > { %p461_p12 = scmp.ne.s32.totalorder %s681_s7, %s460_s19  ;;  %p462_p13 = pneg %p683_p11 }
  0x28   : > { %p466_p10 = scmp.lt.u32.totalorder %s681_s7, %s787_s0  ;;  %p467_p2 = scmp.lt.u32.totalorder %s465_s24, %s460_s19 }
  0x29   : > { %p463_p5 = pnand %p462_p13, %p461_p12  ;;  %p469_p0 = scmp.lt.u32.totalorder %s460_s19, %s681_s7 }
  0x2a   : > { %p468_p1 = por %p467_p2, %p466_p10 }
  0x2b   : > { %p464_p7 = pneg %p463_p5 }
  0x2c   : > { %p470_p3 = por %p469_p0, %p468_p1 }
  0x2e   : > { %p471_p6 = pnand %p470_p3, %p464_p7 }
  0x30   : > { %474 = shalt.err (!%p471_p6)
}
  0x31   : > { %s475_s27 = scalar_lea.vmem %s687_s14, 128  ;;  %s563_s30 = smov [#allocation2]  }
  0x32   : > { %p476_p12 = scmp.ne.s32.totalorder %s687_s14, %s475_s27  ;;  %s480_s3 = sshll.u32 %s563_s30, 4  ;;  %s481_s3 = int_to_ptr.vmem [resolvable:$false] %s480_s3 }
  0x33   : > { %s482_s4 = scalar_lea.vmem %s481_s3, 256  ;;  %p483_p4 = scmp.lt.s32.totalorder %s687_s14, %s481_s3 }
  0x34   : > { %p478_p5 = pnand %p476_p12, %p462_p13  ;;  %p484_p10 = scmp.lt.s32.totalorder %s482_s4, %s475_s27 }
  0x36   : > { %p479_p9 = pneg %p478_p5  ;;  %p485_p2 = por %p484_p10, %p483_p4 }
  0x38   : > { %p486_p1 = pnand %p485_p2, %p479_p9 }
  0x3a   : > { %489 = shalt.err (!%p486_p1)
}
  0x3b   : > { %393 = dma.hbm_to_vmem [thread:$0]  (!%p683_p11), %s681_s7, 128, %s687_s14, %s122_s18  }
  0x3c   : > { %142 = sbr.rel (%p628_p8) target bundleno = 516 (0x204), region = 28  ;;  %s717_s5 = sand.u32 (!%p628_p8), 1, %s552_s10  }
  0x3d   : > { %s363_s6 = sshll.u32 (!%p628_p8), %s717_s5, 3  ;;  %s145_s8 = scalar_lea.sflag (!%p628_p8), [#allocation3], %s717_s5 }
  0x3e   : > { %s148_s19 = scalar_lea.vmem (!%p628_p8), [#allocation2], %s363_s6  ;;  %p801_p4 = scmp.ne.s32.totalorder (!%p628_p8), %s793_s15, 0 }
  0x43   : > { %535 = dma.done.wait (%p801_p4), %s145_s8, 128  }
  0x44   : > { %537 = vsyncadd (%p801_p4), %s145_s8, 4294967168  ;;  %p802_p6 = scmp.eq.s32.totalorder %s606_s13, 0 }
  0x46   : > { %539 = dma.done.wait (%p802_p6), [#allocation5], 16   ;;  %p803_p8 = pmov %p802_p6 }
  0x48   : > { %541 = vsyncadd (%p803_p8), [#allocation5], 4294967280 }
  0x49   : > { %157 = sfence }
  0x4a   : > { %v731_v0 = vld [vmem:[%s148_s19] sm:$0xff]  ;;  %vm178_vm0 = vcmask 1043456   ;;  %v186_v5 = vlaneseq  ;;  %s367_s15 = sld [smem:[#allocation6 + $0x2]]  ;;  %s366_s20 = sld [smem:[#allocation6 + $0x1]]  ;;  %vm194_vm1 = vcmask 15360   ;;  %vm196_vm2 = vcmask 48128  }
  0x4b   : > { %v176_v1 = vcombine.high %v731_v0, %v731_v0  ;;  %v179_v2 = vsel %vm178_vm0, %v731_v0, 0.0  ;;  %s368_s7 = sld [smem:[#allocation6 + $0x3]]  ;;  %s369_s14 = sld [smem:[#allocation6 + $0x4]]  ;;  %v568_v39 = vmov 839922192  }
  0x4c   : > { %v187_v6 = vand.u32 127, %v186_v5  ;;  %v190_v8 = vshrl.u32 %v186_v5, 7  ;;  %s564_s17 = smov 126   ;;  %s565_s18 = smov 127   ;;  %v249_v40 = vunpack.c.l.s4 %v568_v39 }
  0x4d   : > { %v180_v3 = vsel %vm178_vm0, %v176_v1, 0.0  ;;  %s566_s22 = smov 125   ;;  %s567_s23 = smov 124  }
  0x4e   : > { %v181_v4 = vadd.f32 %v180_v3, %v179_v2  ;;  %v188_v7 = vadd.s32 4294967294, %v187_v6  ;;  %s198_s24 = sld [smem:[#allocation6]]  ;;  %v242_v36 = vsub.s32 0, %v190_v8  ;;  %v250_v41 = vunpack.c.0.s8 %v249_v40  ;;  %s377_s25 = sshll.u32 %s606_s13, 7 }
  0x4f   : > { %s173_s26 = scalar_lea.vmem [#allocation7], %s363_s6  ;;  %s743_s4 = scalar_lea.hbm %s789_s2, %s377_s25 }
  0x50   : > { %182 = vadd.xlane.f32.xlu0 %v181_v4  ;;  %v191_v9 = vsub.s32 %v188_v7, %v190_v8  ;;  %v211_v13 = vstv %s367_s15  ;;  %v203_v14 = vstv %s366_s20  ;;  %v253_v42 = vsub.s32 %v250_v41, %v190_v8  ;;  %s273_s27 = sshll.u32 %s173_s26, 4  ;;  %s259_s8 = scalar_lea.sflag [#allocation4], %s717_s5  ;;  %s745_s27 = int_to_ptr.vmem [resolvable:$true] %s273_s27 }
  0x51   : > { %v219_v19 = vstv %s368_s7  ;;  %v227_v21 = vstv %s369_s14  ;;  %s490_s19 = scalar_lea.vmem %s745_s27, 128  ;;  %p804_p11 = scmp.ne.s32.totalorder %s799_s29, 0 }
  0x52   : > { %p491_p9 = scmp.ne.s32.totalorder %s745_s27, %s490_s19  ;;  %s569_s13 = smov [#allocation7]  }
  0x53   : > { %s494_s6 = sshll.u32 %s569_s13, 4  ;;  %s495_s6 = int_to_ptr.vmem [resolvable:$false] %s494_s6 }
  0x54   : > { %v199_v23 = vstv %s198_s24  ;;  %p492_p13 = pnand %p491_p9, %p804_p11  ;;  %s496_s15 = scalar_lea.vmem %s495_s6, 256 }
  0x55   : > { %p497_p0 = scmp.lt.s32.totalorder %s745_s27, %s495_s6  ;;  %p498_p3 = scmp.lt.s32.totalorder %s496_s15, %s490_s19 }
  0x56   : > { %p493_p7 = pneg %p492_p13 }
  0x57   : > { %p499_p12 = por %p498_p3, %p497_p0 }
  0x59   : > { %p500_p5 = pnand %p499_p12, %p493_p7 }
  0xdd   : > { %v183_v10 = vpop.xlane.xlu0 %182 }
  0xde   : > { %v184_v11 = vmul.f32 0.00390625, %v183_v10 }
  0xe0   : > { %v192_v12 = vrot.slane %v184_v11, %v191_v9 }
  0xe2   : > { %v195_v15 = vsel %vm194_vm1, 0.0, %v192_v12 }
  0xe3   : > { %v197_v16 = vsel %vm196_vm2, %v195_v15, 0.0 }
  0xe4   : > { %v212_v17 = vmul.f32 %v211_v13, %v197_v16  ;;  %v204_v18 = vmul.f32 %v203_v14, %v197_v16  ;;  %v220_v20 = vmul.f32 %v219_v19, %v197_v16  ;;  %v228_v22 = vmul.f32 %v227_v21, %v197_v16 }
  0xe5   : > { %v200_v24 = vmul.f32 %v199_v23, %v197_v16 }
  0xe6   : > { %214 = vrot.lane.b32.xlu1 %v212_v17, %s564_s17  ;;  %206 = vrot.lane.b32.xlu0 %v204_v18, %s565_s18 }
  0xea   : > { %222 = vrot.lane.b32.xlu1 %v220_v20, %s566_s22 }
  0xee   : > { %230 = vrot.lane.b32.xlu1 %v228_v22, %s567_s23 }
 0x158   : > { %v215_v25 = vpop.permute.xlu1 %214  ;;  %v207_v26 = vpop.permute.xlu0 %206 }
 0x159   : > { %v209_v27 = vadd.f32 %v207_v26, %v200_v24 }
 0x15b   : > { %v217_v28 = vadd.f32 %v215_v25, %v209_v27 }
 0x15c   : > { %v223_v29 = vpop.permute.xlu1 %222 }
 0x15d   : > { %v225_v30 = vadd.f32 %v223_v29, %v217_v28 }
 0x160   : > { %v231_v31 = vpop.permute.xlu1 %230 }
 0x161   : > { %v233_v32 = vadd.f32 %v231_v31, %v225_v30 }
 0x163   : > { %v370_v33 = vmul.f32 -1.442695, %v233_v32 }
 0x165   : > { %441 = vpow2.f32 %v370_v33 }
 0x16f   : > { %v442_v34 = vpop.eup %441 }
 0x170   : > { %v237_v35 = vadd.f32 1.0, %v442_v34 }
 0x172   : > { %443 = vrcp.f32 %v237_v35 }
 0x17c   : > { %v444_v37 = vpop.eup %443 }
 0x17d   : > { %v243_v38 = vrot.slane %v444_v37, %v242_v36 }
 0x17f   : > { %245 = vbcast.lane.b32.xlu1 %v243_v38, 256 }
 0x1f1   : > { %v246_v43 = vpop.permute.xlu1 %245 }
 0x1f2   : > { %v254_v44 = vrot.slane %v246_v43, %v253_v42 }
 0x1f4   : > { %v256_v45 = vmul.f32 %v254_v44, %v731_v0 }
 0x1f6   : > { %257 = vst [vmem:[%s173_s26] sm:$0xff] %v256_v45 }
 0x1f7   : > { %503 = shalt.err (!%p500_p5)
}
 0x1f8   : > { %s504_s5 = scalar_lea.hbm %s743_s4, 128  ;;  %s508_s14 = scalar_lea.hbm %s789_s2, 256 }
 0x1f9   : > { %p505_p10 = scmp.ne.s32.totalorder %s743_s4, %s504_s5  ;;  %p509_p4 = scmp.lt.u32.totalorder %s743_s4, %s789_s2 }
 0x1fa   : > { %p510_p6 = scmp.lt.u32.totalorder %s508_s14, %s504_s5  ;;  %p512_p9 = scmp.lt.u32.totalorder %s504_s5, %s743_s4 }
 0x1fb   : > { %p506_p2 = pnand %p505_p10, %p804_p11 }
 0x1fc   : > { %p511_p8 = por %p510_p6, %p509_p4 }
 0x1fd   : > { %p507_p1 = pneg %p506_p2 }
 0x1fe   : > { %p513_p13 = por %p512_p9, %p511_p8 }
 0x200   : > { %p514_p7 = pnand %p513_p13, %p507_p1 }
 0x202   : > { %517 = shalt.err (!%p514_p7)
}
 0x203   : > { %384 = dma.vmem_to_hbm [thread:$0]  (%p804_p11), %s745_s27, 128, %s743_s4, %s259_s8  }
 0x204 PF: > { %s285_s22 = sand.u32 1, %s548_s9   ;;  %p805_p0 = scmp.ne.s32.totalorder %s794_s16, 0 }
 0x205   : > { %p806_p3 = scmp.ge.s32.totalorder %s560_s12, 2  ;;  %s286_s23 = scalar_lea.sflag [#allocation4], %s285_s22 }
 0x207   : > { %p395_p12 = pnand %p806_p3, %p805_p0 }
 0x209   : > { %543 = dma.done.wait (!%p395_p12), %s286_s23, 128  }
 0x20a   : > { %545 = vsyncadd (!%p395_p12), %s286_s23, 4294967168  ;;  %p16_p5 = scmp.ge.s32.totalorder %s636_s21, 4   ;;  %s807_s9 = smov %s552_s10 }
 0x20b   : > { %s808_s10 = smov %s556_s11  ;;  %s809_s11 = smov %s660_s28 }
 0x20c   : > { %s810_s12 = smov %s636_s21  ;;  %18 = sbr.rel (!%p16_p5) target bundleno = 6 (0x6), region = 78 }
 0x213   :  { %291 = vsyncpa [#allocation3], 1 }
 0x214   :  { %293 = vsyncpa [#allocation3 + $0x1], 1 }
 0x215   :  { %294 = vsyncpa [#allocation4], 1 }
 0x216   :  { %296 = vsyncpa [#allocation4 + $0x1], 1 }
 0x217   :  { %297 = vsyncpa [#allocation5], 1 }
 0x218   :  { %299 = vsyncpa [#allocation5 + $0x1], 1 }

</bundles_post_ra>
